<compile_context>
chip_gen: v6e
topology: v6e:2x2x1
jax: 0.10.0
libtpu: 0.0.40
codegen_flags: <defaults>
</compile_context>

<pallas_src>
import numpy as np
import jax
import jax.numpy as jnp
from jax.experimental import pallas as pl
from jax.experimental.pallas import tpu as pltpu

# ---- model hyper-parameters (small, consistent with the PyTorch module) ----
B        = 2                       # batch
MAX_LEN  = 16                      # max_len (sequence length)
EMB_DIM  = 32                      # embedding_dim
VOCAB    = 50                      # vocab_size
K        = 5                       # Conv1d kernel_size
C_OUT    = 128                     # Conv1d out_channels
HIDDEN   = 128                     # fc1 out_features
L_CONV   = MAX_LEN - K + 1         # 12  (valid conv output length)
L_POOL   = L_CONV // 2             # 6   (MaxPool1d(kernel_size=2))
LB       = MAX_LEN * B             # 32  (time-major embedding rows)
LCB      = L_CONV * B              # 24  (conv output rows, (t, b) order)


def cnn_kernel(emb_ref, wc_ref, w1_hbm, aux_ref, o_ref, w1_vmem, w1_sem):
    """Single invocation, whole batch.

    emb_ref : (L*B, E)       bf16  embedding rows, row = t*B + b
    wc_ref  : (K, E, C)      bf16  conv weights
    w1_hbm  : (P, C, H)      bf16  fc1 weights, raw HBM ref (manual DMA)
    aux_ref : (4, 128)       f32   [conv_b; fc1_b; fc2_w row; fc2_b in lane 0]
    o_ref   : (B, 1)         f32
    """
    # Start the fc1-weight DMA immediately; it hides behind the conv matmuls.
    w1_copy = pltpu.make_async_copy(w1_hbm, w1_vmem, w1_sem)
    w1_copy.start()

    # ---- Conv1d(E -> 128, k=5) as K accumulated MXU dots ----
    # Row (t+k)*B + b of emb is exactly rows [k*B : k*B + L_CONV*B) -> each tap
    # is a contiguous static slice; no im2col concat needed.
    emb = emb_ref[...]                                      # (32, 32) bf16
    conv = jnp.zeros((LCB, C_OUT), jnp.float32)
    for k in range(K):                                      # unrolled, static slices
        slab = emb[k * B:k * B + LCB, :]                    # (24, 32) bf16
        conv = conv + jnp.dot(slab, wc_ref[k],
                              preferred_element_type=jnp.float32)
    conv = jnp.maximum(conv + aux_ref[0:1, :], 0.0)         # bias + ReLU (f32)

    # ---- MaxPool1d(2) + channel-major flatten + fc1, as per-window dots ----
    # Window p uses rows [2p*B, 2p*B+B) and [(2p+1)*B, (2p+1)*B+B); the pooled
    # (B, C) block is contracted against w1[p] and accumulated in f32 -> no
    # 768-lane concatenation / relayout.
    w1_copy.wait()                                          # fc1 weights now in VMEM
    z = jnp.zeros((B, HIDDEN), jnp.float32)
    for p in range(L_POOL):                                 # unrolled
        lo = 2 * p * B
        pooled = jnp.maximum(conv[lo:lo + B, :], conv[lo + B:lo + 2 * B, :])
        z = z + jnp.dot(pooled.astype(jnp.bfloat16), w1_vmem[p],
                        preferred_element_type=jnp.float32)
    z = jnp.maximum(z + aux_ref[1:2, :], 0.0)               # fc1 bias + ReLU (f32)
    # Dropout(p=0.5): eval-mode identity (no-op at inference).

    # ---- fc2 on VPU/XLU (mul + lane reduce) + sigmoid via EUP reciprocal ----
    logits = jnp.sum(z * aux_ref[2:3, :], axis=-1, keepdims=True) + aux_ref[3:4, 0:1]
    o_ref[...] = pl.reciprocal(1.0 + jnp.exp(-logits), approx=True)  # (B, 1) f32


def prepare_params(params):
    """ONE-TIME layout/cast of weights into kernel-ready form.

    Hoisted out of the per-call jitted path (perf-review item 1): nothing here
    depends on x_ids, so it must not re-run every forward.
    """
    # Embedding table stored bf16 so the gather already yields bf16 MXU operands.
    table = params["embedding"].astype(jnp.bfloat16)                       # (V, E)
    # Conv weight (C, E, K) -> (K, E, C): tap-major, matching the in-kernel slices.
    wc = jnp.transpose(params["conv_w"], (2, 1, 0)).astype(jnp.bfloat16)   # (K, E, C)
    # fc1.weight (H, C*P) over PyTorch's channel-major flatten -> (P, C, H) so the
    # kernel can accumulate z += pooled_p @ w1[p].
    w1 = jnp.transpose(params["fc1_w"].reshape(HIDDEN, C_OUT, L_POOL),
                       (2, 1, 0)).astype(jnp.bfloat16)                     # (P, C, H)
    # Pack the four tiny f32 operands into one (4, 128) slab (one DMA).
    row3 = jnp.zeros((HIDDEN,), jnp.float32).at[0].set(params["fc2_b"][0])
    aux = jnp.stack([params["conv_b"],
                     params["fc1_b"],
                     params["fc2_w"].reshape(HIDDEN),
                     row3], axis=0).astype(jnp.float32)                    # (4, 128)
    return {"table": table, "wc": wc, "w1": w1, "aux": aux}


@jax.jit
def cnn_forward(x_ids, kp):
    # The ONLY per-call XLA prep is the embedding gather, emitted directly in
    # time-major (t, b) row order (row = t*B + b) -- no transpose/reshape/cast
    # fusions and no HBM round-trip of an im2col intermediate.
    ids_tm = jnp.transpose(x_ids).reshape(-1)               # (L*B,) int32
    emb = jnp.take(kp["table"], ids_tm, axis=0)             # (L*B, E) bf16

    vmem = pltpu.MemorySpace.VMEM
    return pl.pallas_call(
        cnn_kernel,
        out_shape=jax.ShapeDtypeStruct((B, 1), jnp.float32),
        # No grid: a single invocation (footprint ~250 KB << VMEM on v5e/v6e/v7x).
        in_specs=[
            pl.BlockSpec(memory_space=vmem),       # emb rows
            pl.BlockSpec(memory_space=vmem),       # conv weights
            pl.BlockSpec(memory_space=pl.ANY),     # fc1 weights: manual DMA overlap
            pl.BlockSpec(memory_space=vmem),       # packed biases / fc2 row
        ],
        out_specs=pl.BlockSpec(memory_space=vmem),
        scratch_shapes=[
            pltpu.VMEM((L_POOL, C_OUT, HIDDEN), jnp.bfloat16),  # fc1 weight buffer
            pltpu.SemaphoreType.DMA,                            # its DMA semaphore
        ],
    )(emb, kp["wc"], kp["w1"], kp["aux"])


def init_params(key):
    """Deterministic synthetic parameters with PyTorch-layout shapes."""
    ks = jax.random.split(key, 7)
    return {
        "embedding": jax.random.normal(ks[0], (VOCAB, EMB_DIM), jnp.float32) * 0.1,
        "conv_w":    jax.random.normal(ks[1], (C_OUT, EMB_DIM, K), jnp.float32) * 0.05,
        "conv_b":    jax.random.normal(ks[2], (C_OUT,), jnp.float32) * 0.01,
        "fc1_w":     jax.random.normal(ks[3], (HIDDEN, C_OUT * L_POOL), jnp.float32) * 0.02,
        "fc1_b":     jax.random.normal(ks[4], (HIDDEN,), jnp.float32) * 0.01,
        "fc2_w":     jax.random.normal(ks[5], (1, HIDDEN), jnp.float32) * 0.05,
        "fc2_b":     jax.random.normal(ks[6], (1,), jnp.float32) * 0.01,
    }


def ref_forward(x_ids, params, mixed=False):
    """Pure-JAX reference mirroring the PyTorch forward (eval mode).

    mixed=False: exact f32 module semantics.
    mixed=True : casts matmul operands to bf16 at the same points as the kernel
                 (f32 accumulation) for a tight numerical cross-check.
    """
    cast = (lambda a: a.astype(jnp.bfloat16)) if mixed else (lambda a: a)
    emb = jnp.take(params["embedding"], x_ids, axis=0)            # (B, L, E)
    wc = jnp.transpose(params["conv_w"], (2, 1, 0))               # (K, E, C)
    conv = sum(jnp.einsum("ble,ec->blc", cast(emb[:, k:k + L_CONV, :]), cast(wc[k]),
                          preferred_element_type=jnp.float32)
               for k in range(K)) + params["conv_b"][None, None, :]
    conv = jnp.maximum(conv, 0.0)                                 # (B, Lc, C)
    pooled = jnp.max(conv.reshape(B, L_POOL, 2, C_OUT), axis=2)   # (B, P, C)
    # PyTorch flattens the (B, C, P) map channel-major:
    flat = jnp.transpose(pooled, (0, 2, 1)).reshape(B, C_OUT * L_POOL)
    z = jnp.dot(cast(flat), cast(params["fc1_w"].T),
                preferred_element_type=jnp.float32) + params["fc1_b"]
    z = jnp.maximum(z, 0.0)
    out = z @ params["fc2_w"].T + params["fc2_b"]
    return jax.nn.sigmoid(out)


if __name__ == "__main__":
    key = jax.random.PRNGKey(0)
    k_par, k_ids = jax.random.split(key)
    params = init_params(k_par)
    kparams = prepare_params(params)           # one-time weight layout/casts
    x_ids = jax.random.randint(k_ids, (B, MAX_LEN), 0, VOCAB, dtype=jnp.int32)

    out = jax.block_until_ready(cnn_forward(x_ids, kparams))
    assert out.shape == (B, 1) and out.dtype == jnp.float32

    # Tight check vs a reference quantized exactly like the kernel (bf16 matmul
    # operands, f32 accumulation); small slack for the approximate reciprocal.
    ref_bf16 = jax.block_until_ready(ref_forward(x_ids, params, mixed=True))
    np.testing.assert_allclose(np.asarray(out), np.asarray(ref_bf16),
                               rtol=2e-3, atol=1e-3)
    # Loose check vs exact f32 module semantics (bf16 rounding only).
    ref_f32 = jax.block_until_ready(ref_forward(x_ids, params, mixed=False))
    np.testing.assert_allclose(np.asarray(out), np.asarray(ref_f32),
                               rtol=2e-2, atol=2e-2)
    print("KERNEL_OK")
</pallas_src>

<mosaic_0001>
module attributes {stable_mosaic.version = 11 : i64} {
  func.func @cnn_kernel(%arg0: memref<32x32xbf16, #tpu.memory_space<vmem>>, %arg1: memref<5x32x128xbf16, #tpu.memory_space<vmem>>, %arg2: memref<6x128x128xbf16, #tpu.memory_space<any>>, %arg3: memref<4x128xf32, #tpu.memory_space<vmem>>, %arg4: memref<2x1xf32, #tpu.memory_space<vmem>>, %arg5: memref<6x128x128xbf16, #tpu.memory_space<vmem>>, %arg6: memref<!tpu.dma_semaphore, #tpu.memory_space<semaphore_mem>>) attributes {dimension_semantics = [], scalar_prefetch = 0 : i64, scratch_operands = 2 : i64, tpu.core_type = #tpu.core_type<tc>} {
    tpu.enqueue_dma source(%arg2 : memref<6x128x128xbf16, #tpu.memory_space<any>>) target(%arg5 : memref<6x128x128xbf16, #tpu.memory_space<vmem>>) target_semaphore(%arg6 : memref<!tpu.dma_semaphore, #tpu.memory_space<semaphore_mem>>)
    %c0 = arith.constant 0 : index
    %c0_0 = arith.constant 0 : index
    %0 = vector.load %arg0[%c0, %c0_0] : memref<32x32xbf16, #tpu.memory_space<vmem>>, vector<32x32xbf16>
    %cst = arith.constant 0.000000e+00 : f32
    %1 = vector.broadcast %cst : f32 to vector<24x128xf32>
    %2 = vector.extract_strided_slice %0 {offsets = [0, 0], sizes = [24, 32], strides = [1, 1]} : vector<32x32xbf16> to vector<24x32xbf16>
    %c0_1 = arith.constant 0 : index
    %c0_2 = arith.constant 0 : index
    %c0_3 = arith.constant 0 : index
    %3 = vector.load %arg1[%c0_1, %c0_2, %c0_3] : memref<5x32x128xbf16, #tpu.memory_space<vmem>>, vector<1x32x128xbf16>
    %4 = vector.shape_cast %3 : vector<1x32x128xbf16> to vector<32x128xbf16>
    %cst_4 = arith.constant dense<0.000000e+00> : vector<24x128xf32>
    %5 = tpu.matmul %2, %4, %cst_4 {dimension_numbers = #tpu.dot_dimension_numbers<[1], [0], [0], [1], [0, 0, 1, 1], [], []>} : vector<24x32xbf16>, vector<32x128xbf16>, vector<24x128xf32> -> vector<24x128xf32>
    %6 = arith.addf %1, %5 : vector<24x128xf32>
    %7 = vector.extract_strided_slice %0 {offsets = [2, 0], sizes = [24, 32], strides = [1, 1]} : vector<32x32xbf16> to vector<24x32xbf16>
    %c1 = arith.constant 1 : index
    %c0_5 = arith.constant 0 : index
    %c0_6 = arith.constant 0 : index
    %8 = vector.load %arg1[%c1, %c0_5, %c0_6] : memref<5x32x128xbf16, #tpu.memory_space<vmem>>, vector<1x32x128xbf16>
    %9 = vector.shape_cast %8 : vector<1x32x128xbf16> to vector<32x128xbf16>
    %cst_7 = arith.constant dense<0.000000e+00> : vector<24x128xf32>
    %10 = tpu.matmul %7, %9, %cst_7 {dimension_numbers = #tpu.dot_dimension_numbers<[1], [0], [0], [1], [0, 0, 1, 1], [], []>} : vector<24x32xbf16>, vector<32x128xbf16>, vector<24x128xf32> -> vector<24x128xf32>
    %11 = arith.addf %6, %10 : vector<24x128xf32>
    %12 = vector.extract_strided_slice %0 {offsets = [4, 0], sizes = [24, 32], strides = [1, 1]} : vector<32x32xbf16> to vector<24x32xbf16>
    %c2 = arith.constant 2 : index
    %c0_8 = arith.constant 0 : index
    %c0_9 = arith.constant 0 : index
    %13 = vector.load %arg1[%c2, %c0_8, %c0_9] : memref<5x32x128xbf16, #tpu.memory_space<vmem>>, vector<1x32x128xbf16>
    %14 = vector.shape_cast %13 : vector<1x32x128xbf16> to vector<32x128xbf16>
    %cst_10 = arith.constant dense<0.000000e+00> : vector<24x128xf32>
    %15 = tpu.matmul %12, %14, %cst_10 {dimension_numbers = #tpu.dot_dimension_numbers<[1], [0], [0], [1], [0, 0, 1, 1], [], []>} : vector<24x32xbf16>, vector<32x128xbf16>, vector<24x128xf32> -> vector<24x128xf32>
    %16 = arith.addf %11, %15 : vector<24x128xf32>
    %17 = vector.extract_strided_slice %0 {offsets = [6, 0], sizes = [24, 32], strides = [1, 1]} : vector<32x32xbf16> to vector<24x32xbf16>
    %c3 = arith.constant 3 : index
    %c0_11 = arith.constant 0 : index
    %c0_12 = arith.constant 0 : index
    %18 = vector.load %arg1[%c3, %c0_11, %c0_12] : memref<5x32x128xbf16, #tpu.memory_space<vmem>>, vector<1x32x128xbf16>
    %19 = vector.shape_cast %18 : vector<1x32x128xbf16> to vector<32x128xbf16>
    %cst_13 = arith.constant dense<0.000000e+00> : vector<24x128xf32>
    %20 = tpu.matmul %17, %19, %cst_13 {dimension_numbers = #tpu.dot_dimension_numbers<[1], [0], [0], [1], [0, 0, 1, 1], [], []>} : vector<24x32xbf16>, vector<32x128xbf16>, vector<24x128xf32> -> vector<24x128xf32>
    %21 = arith.addf %16, %20 : vector<24x128xf32>
    %22 = vector.extract_strided_slice %0 {offsets = [8, 0], sizes = [24, 32], strides = [1, 1]} : vector<32x32xbf16> to vector<24x32xbf16>
    %c4 = arith.constant 4 : index
    %c0_14 = arith.constant 0 : index
    %c0_15 = arith.constant 0 : index
    %23 = vector.load %arg1[%c4, %c0_14, %c0_15] : memref<5x32x128xbf16, #tpu.memory_space<vmem>>, vector<1x32x128xbf16>
    %24 = vector.shape_cast %23 : vector<1x32x128xbf16> to vector<32x128xbf16>
    %cst_16 = arith.constant dense<0.000000e+00> : vector<24x128xf32>
    %25 = tpu.matmul %22, %24, %cst_16 {dimension_numbers = #tpu.dot_dimension_numbers<[1], [0], [0], [1], [0, 0, 1, 1], [], []>} : vector<24x32xbf16>, vector<32x128xbf16>, vector<24x128xf32> -> vector<24x128xf32>
    %26 = arith.addf %21, %25 : vector<24x128xf32>
    %c0_17 = arith.constant 0 : index
    %c0_18 = arith.constant 0 : index
    %27 = vector.load %arg3[%c0_17, %c0_18] : memref<4x128xf32, #tpu.memory_space<vmem>>, vector<1x128xf32>
    %28 = vector.broadcast %27 : vector<1x128xf32> to vector<24x128xf32>
    %29 = arith.addf %26, %28 : vector<24x128xf32>
    %cst_19 = arith.constant 0.000000e+00 : f32
    %30 = vector.broadcast %cst_19 : f32 to vector<24x128xf32>
    %31 = arith.maximumf %29, %30 : vector<24x128xf32>
    tpu.wait_dma2 semaphore(%arg6 : memref<!tpu.dma_semaphore, #tpu.memory_space<semaphore_mem>>) src(%arg2 : memref<6x128x128xbf16, #tpu.memory_space<any>>) dst(%arg5 : memref<6x128x128xbf16, #tpu.memory_space<vmem>>)
    %cst_20 = arith.constant 0.000000e+00 : f32
    %32 = vector.broadcast %cst_20 : f32 to vector<2x128xf32>
    %33 = vector.extract_strided_slice %31 {offsets = [0, 0], sizes = [2, 128], strides = [1, 1]} : vector<24x128xf32> to vector<2x128xf32>
    %34 = vector.extract_strided_slice %31 {offsets = [2, 0], sizes = [2, 128], strides = [1, 1]} : vector<24x128xf32> to vector<2x128xf32>
    %35 = arith.maximumf %33, %34 : vector<2x128xf32>
    %36 = arith.truncf %35 : vector<2x128xf32> to vector<2x128xbf16>
    %c0_21 = arith.constant 0 : index
    %c0_22 = arith.constant 0 : index
    %c0_23 = arith.constant 0 : index
    %37 = vector.load %arg5[%c0_21, %c0_22, %c0_23] : memref<6x128x128xbf16, #tpu.memory_space<vmem>>, vector<1x128x128xbf16>
    %38 = vector.shape_cast %37 : vector<1x128x128xbf16> to vector<128x128xbf16>
    %cst_24 = arith.constant dense<0.000000e+00> : vector<2x128xf32>
    %39 = tpu.matmul %36, %38, %cst_24 {dimension_numbers = #tpu.dot_dimension_numbers<[1], [0], [0], [1], [0, 0, 1, 1], [], []>} : vector<2x128xbf16>, vector<128x128xbf16>, vector<2x128xf32> -> vector<2x128xf32>
    %40 = arith.addf %32, %39 : vector<2x128xf32>
    %41 = vector.extract_strided_slice %31 {offsets = [4, 0], sizes = [2, 128], strides = [1, 1]} : vector<24x128xf32> to vector<2x128xf32>
    %42 = vector.extract_strided_slice %31 {offsets = [6, 0], sizes = [2, 128], strides = [1, 1]} : vector<24x128xf32> to vector<2x128xf32>
    %43 = arith.maximumf %41, %42 : vector<2x128xf32>
    %44 = arith.truncf %43 : vector<2x128xf32> to vector<2x128xbf16>
    %c1_25 = arith.constant 1 : index
    %c0_26 = arith.constant 0 : index
    %c0_27 = arith.constant 0 : index
    %45 = vector.load %arg5[%c1_25, %c0_26, %c0_27] : memref<6x128x128xbf16, #tpu.memory_space<vmem>>, vector<1x128x128xbf16>
    %46 = vector.shape_cast %45 : vector<1x128x128xbf16> to vector<128x128xbf16>
    %cst_28 = arith.constant dense<0.000000e+00> : vector<2x128xf32>
    %47 = tpu.matmul %44, %46, %cst_28 {dimension_numbers = #tpu.dot_dimension_numbers<[1], [0], [0], [1], [0, 0, 1, 1], [], []>} : vector<2x128xbf16>, vector<128x128xbf16>, vector<2x128xf32> -> vector<2x128xf32>
    %48 = arith.addf %40, %47 : vector<2x128xf32>
    %49 = vector.extract_strided_slice %31 {offsets = [8, 0], sizes = [2, 128], strides = [1, 1]} : vector<24x128xf32> to vector<2x128xf32>
    %50 = vector.extract_strided_slice %31 {offsets = [10, 0], sizes = [2, 128], strides = [1, 1]} : vector<24x128xf32> to vector<2x128xf32>
    %51 = arith.maximumf %49, %50 : vector<2x128xf32>
    %52 = arith.truncf %51 : vector<2x128xf32> to vector<2x128xbf16>
    %c2_29 = arith.constant 2 : index
    %c0_30 = arith.constant 0 : index
    %c0_31 = arith.constant 0 : index
    %53 = vector.load %arg5[%c2_29, %c0_30, %c0_31] : memref<6x128x128xbf16, #tpu.memory_space<vmem>>, vector<1x128x128xbf16>
    %54 = vector.shape_cast %53 : vector<1x128x128xbf16> to vector<128x128xbf16>
    %cst_32 = arith.constant dense<0.000000e+00> : vector<2x128xf32>
    %55 = tpu.matmul %52, %54, %cst_32 {dimension_numbers = #tpu.dot_dimension_numbers<[1], [0], [0], [1], [0, 0, 1, 1], [], []>} : vector<2x128xbf16>, vector<128x128xbf16>, vector<2x128xf32> -> vector<2x128xf32>
    %56 = arith.addf %48, %55 : vector<2x128xf32>
    %57 = vector.extract_strided_slice %31 {offsets = [12, 0], sizes = [2, 128], strides = [1, 1]} : vector<24x128xf32> to vector<2x128xf32>
    %58 = vector.extract_strided_slice %31 {offsets = [14, 0], sizes = [2, 128], strides = [1, 1]} : vector<24x128xf32> to vector<2x128xf32>
    %59 = arith.maximumf %57, %58 : vector<2x128xf32>
    %60 = arith.truncf %59 : vector<2x128xf32> to vector<2x128xbf16>
    %c3_33 = arith.constant 3 : index
    %c0_34 = arith.constant 0 : index
    %c0_35 = arith.constant 0 : index
    %61 = vector.load %arg5[%c3_33, %c0_34, %c0_35] : memref<6x128x128xbf16, #tpu.memory_space<vmem>>, vector<1x128x128xbf16>
    %62 = vector.shape_cast %61 : vector<1x128x128xbf16> to vector<128x128xbf16>
    %cst_36 = arith.constant dense<0.000000e+00> : vector<2x128xf32>
    %63 = tpu.matmul %60, %62, %cst_36 {dimension_numbers = #tpu.dot_dimension_numbers<[1], [0], [0], [1], [0, 0, 1, 1], [], []>} : vector<2x128xbf16>, vector<128x128xbf16>, vector<2x128xf32> -> vector<2x128xf32>
    %64 = arith.addf %56, %63 : vector<2x128xf32>
    %65 = vector.extract_strided_slice %31 {offsets = [16, 0], sizes = [2, 128], strides = [1, 1]} : vector<24x128xf32> to vector<2x128xf32>
    %66 = vector.extract_strided_slice %31 {offsets = [18, 0], sizes = [2, 128], strides = [1, 1]} : vector<24x128xf32> to vector<2x128xf32>
    %67 = arith.maximumf %65, %66 : vector<2x128xf32>
    %68 = arith.truncf %67 : vector<2x128xf32> to vector<2x128xbf16>
    %c4_37 = arith.constant 4 : index
    %c0_38 = arith.constant 0 : index
    %c0_39 = arith.constant 0 : index
    %69 = vector.load %arg5[%c4_37, %c0_38, %c0_39] : memref<6x128x128xbf16, #tpu.memory_space<vmem>>, vector<1x128x128xbf16>
    %70 = vector.shape_cast %69 : vector<1x128x128xbf16> to vector<128x128xbf16>
    %cst_40 = arith.constant dense<0.000000e+00> : vector<2x128xf32>
    %71 = tpu.matmul %68, %70, %cst_40 {dimension_numbers = #tpu.dot_dimension_numbers<[1], [0], [0], [1], [0, 0, 1, 1], [], []>} : vector<2x128xbf16>, vector<128x128xbf16>, vector<2x128xf32> -> vector<2x128xf32>
    %72 = arith.addf %64, %71 : vector<2x128xf32>
    %73 = vector.extract_strided_slice %31 {offsets = [20, 0], sizes = [2, 128], strides = [1, 1]} : vector<24x128xf32> to vector<2x128xf32>
    %74 = vector.extract_strided_slice %31 {offsets = [22, 0], sizes = [2, 128], strides = [1, 1]} : vector<24x128xf32> to vector<2x128xf32>
    %75 = arith.maximumf %73, %74 : vector<2x128xf32>
    %76 = arith.truncf %75 : vector<2x128xf32> to vector<2x128xbf16>
    %c5 = arith.constant 5 : index
    %c0_41 = arith.constant 0 : index
    %c0_42 = arith.constant 0 : index
    %77 = vector.load %arg5[%c5, %c0_41, %c0_42] : memref<6x128x128xbf16, #tpu.memory_space<vmem>>, vector<1x128x128xbf16>
    %78 = vector.shape_cast %77 : vector<1x128x128xbf16> to vector<128x128xbf16>
    %cst_43 = arith.constant dense<0.000000e+00> : vector<2x128xf32>
    %79 = tpu.matmul %76, %78, %cst_43 {dimension_numbers = #tpu.dot_dimension_numbers<[1], [0], [0], [1], [0, 0, 1, 1], [], []>} : vector<2x128xbf16>, vector<128x128xbf16>, vector<2x128xf32> -> vector<2x128xf32>
    %80 = arith.addf %72, %79 : vector<2x128xf32>
    %c1_44 = arith.constant 1 : index
    %c0_45 = arith.constant 0 : index
    %81 = vector.load %arg3[%c1_44, %c0_45] : memref<4x128xf32, #tpu.memory_space<vmem>>, vector<1x128xf32>
    %82 = vector.broadcast %81 : vector<1x128xf32> to vector<2x128xf32>
    %83 = arith.addf %80, %82 : vector<2x128xf32>
    %cst_46 = arith.constant 0.000000e+00 : f32
    %84 = vector.broadcast %cst_46 : f32 to vector<2x128xf32>
    %85 = arith.maximumf %83, %84 : vector<2x128xf32>
    %c2_47 = arith.constant 2 : index
    %c0_48 = arith.constant 0 : index
    %86 = vector.load %arg3[%c2_47, %c0_48] : memref<4x128xf32, #tpu.memory_space<vmem>>, vector<1x128xf32>
    %87 = vector.broadcast %86 : vector<1x128xf32> to vector<2x128xf32>
    %88 = arith.mulf %85, %87 : vector<2x128xf32>
    %cst_49 = arith.constant dense<0.000000e+00> : vector<2xf32>
    %89 = vector.multi_reduction <add>, %88, %cst_49 [1] : vector<2x128xf32> to vector<2xf32>
    %90 = vector.shape_cast %89 : vector<2xf32> to vector<2x1xf32>
    %c3_50 = arith.constant 3 : index
    %c0_51 = arith.constant 0 : index
    %91 = vector.load %arg3[%c3_50, %c0_51] : memref<4x128xf32, #tpu.memory_space<vmem>>, vector<1x1xf32>
    %92 = vector.broadcast %91 : vector<1x1xf32> to vector<2x1xf32>
    %93 = arith.addf %90, %92 : vector<2x1xf32>
    %cst_52 = arith.constant 0.000000e+00 : f32
    %94 = vector.broadcast %cst_52 : f32 to vector<2x1xf32>
    %95 = arith.subf %94, %93 : vector<2x1xf32>
    %96 = math.exp %95 : vector<2x1xf32>
    %cst_53 = arith.constant 1.000000e+00 : f32
    %97 = vector.broadcast %cst_53 : f32 to vector<2x1xf32>
    %98 = arith.addf %97, %96 : vector<2x1xf32>
    %99 = tpu.reciprocal %98 {approx = true} : vector<2x1xf32> -> vector<2x1xf32>
    %c0_54 = arith.constant 0 : index
    %c0_55 = arith.constant 0 : index
    %100 = vector.load %arg4[%c0_54, %c0_55] : memref<2x1xf32, #tpu.memory_space<vmem>>, vector<2x1xf32>
    tpu.vector_store %arg4[%c0_54, %c0_55], %99 {strides = array<i32>} : memref<2x1xf32, #tpu.memory_space<vmem>>, vector<2x1xf32>,
    return
  }
}

</mosaic_0001>

<bundles_post_ra>
// kernel: cnn_forward.1
= control target key start
LH: loop header
LB: loop body
LE: loop exit
PB: predicated region body
PF: predicated region fallthrough
CT: control target
= control target key end

     0   :  { %vm50_vm0 = vcmask 1046528   ;;  %vm66_vm1 = vcmask 261120   ;;  %vm193_vm2 = vcmask 1045504   ;;  %vm271_vm3 = vcmask 1044480   ;;  %s1553_s16 = smov [#allocation2]   ;;  %s1727_s1 = inlined_call_operand.vmem [shape: bf16[5,32,128], index: 1, kind: input, shape index: {}]   ;;  %s1728_s0 = inlined_call_operand.vmem [shape: bf16[32,32], index: 0, kind: input, shape index: {}]   ;;  %s1729_s2 = inlined_call_operand.hbm [shape: bf16[6,128,128], index: 2, kind: input, shape index: {}]   ;;  %s1730_s4 = inlined_call_operand.vmem [shape: f32[2,1], index: 4, kind: output, shape index: {}]   ;;  %s1731_s3 = inlined_call_operand.vmem [shape: f32[4,128], index: 3, kind: input, shape index: {}]  }
   0x1   :  { %v1464_v0 = vld [vmem:[%s1727_s1 + $0x18] sm:$0xff]   ;;  %v1465_v1 = vld [vmem:[%s1727_s1 + $0x8] sm:$0xff]   ;;  %v1466_v2 = vld [vmem:[%s1727_s1 + $0x10] sm:$0xff]   ;;  %s23_s17 = sshll.u32 %s1553_s16, 4  ;;  %s24_s17 = int_to_ptr.vmem [resolvable:$true] %s23_s17 }
   0x2   :  { %1301 = vmatprep.subr.bf16.mxu0 %v1464_v0  ;;  %1309 = vmatprep.subr.bf16.mxu1 %v1465_v1  ;;  %v1467_v3 = vld [vmem:[%s1727_s1] sm:$0xff]   ;;  %v29_v6 = vld [vmem:[%s1728_s0 + $0x8] sm:$0xf]  ;;  %v30_v7 = vld [vmem:[%s1728_s0 + $0xc] sm:$0xf]  ;;  %s1539_s18 = scalar_lea.vmem %s24_s17, 6144  ;;  %p1544_p1 = scmp.lt.s32.totalorder %s24_s17, %s24_s17 }
   0x3   :  { %1302 = vmatpush3.bf16.msra.mxu0 %v1464_v0  ;;  %1310 = vmatpush3.bf16.msra.mxu1 %v1465_v1  ;;  %v27_v4 = vld [vmem:[%s1728_s0] sm:$0xf]  ;;  %v28_v5 = vld [vmem:[%s1728_s0 + $0x4] sm:$0xf]  ;;  %v1138_v9 = vcombine.low %v29_v6, %v30_v7  ;;  %v1472_v10 = vld [vmem:[%s1727_s1 + $0x28] sm:$0xff]   ;;  %v1143_v12 = vcombine.low %v29_v6, %v29_v6  ;;  %v1169_v27 = vcombine.low %v30_v7, %v30_v7  ;;  %p1540_p0 = scmp.ne.s32.totalorder %s24_s17, %s1539_s18  ;;  %p1545_p2 = scmp.lt.s32.totalorder %s1539_s18, %s1539_s18 }
   0x4   :  { %1303 = vmatprep.subr.bf16.mxu0 %v1466_v2  ;;  %1311 = vmatprep.subr.bf16.mxu1 %v1467_v3  ;;  %v1137_v8 = vcombine.low %v27_v4, %v28_v5  ;;  %v1473_v13 = vld [vmem:[%s1727_s1 + $0x38] sm:$0xff]   ;;  %v1474_v15 = vld [vmem:[%s1727_s1 + $0x20] sm:$0xff]   ;;  %v1475_v16 = vld [vmem:[%s1727_s1 + $0x30] sm:$0xff]   ;;  %v1168_v25 = vcombine.low %v28_v5, %v29_v6 }
   0x5   :  { %v52_v14 = vrot.slane %v1138_v9, 1  ;;  %v195_v18 = vrot.slane %v1138_v9, 2  ;;  %v273_v20 = vrot.slane %v1138_v9, 3  ;;  %v1476_v24 = vld [vmem:[%s1727_s1 + $0x48] sm:$0xff]   ;;  %v1477_v26 = vld [vmem:[%s1727_s1 + $0x40] sm:$0xff]   ;;  %p1546_p3 = por %p1545_p2, %p1544_p1 }
   0x6   :  { %v51_v11 = vrot.slane %v1137_v8, 1  ;;  %1313 = vmatprep.mubr.msk.bf16.mxu1 %vm66_vm1, %v1137_v8  ;;  %v194_v17 = vrot.slane %v1137_v8, 2  ;;  %v272_v19 = vrot.slane %v1137_v8, 3 }
   0x7   :  { %1304 = vmatpush3.bf16.msra.mxu0 %v1466_v2  ;;  %1312 = vmatpush3.bf16.msra.mxu1 %v1467_v3  ;;  %p1547_p4 = pnand %p1546_p3, %p1540_p0 }
   0x8   :  { %1317 = vmatprep.subr.bf16.mxu0 %v1472_v10  ;;  %1325 = vmatprep.subr.bf16.mxu1 %v1473_v13  ;;  %v53_v21 = vsel %vm50_vm0, %v51_v11, %v52_v14  ;;  %v196_v22 = vsel %vm193_vm2, %v194_v17, %v195_v18  ;;  %v274_v23 = vsel %vm271_vm3, %v272_v19, %v273_v20 }
   0x9   :  { %1305 = vmatprep.mubr.msk.bf16.mxu0 %vm66_vm1, %v53_v21 }
   0xa   :  { %1314 = vmatmul.mubr.msk.bf16.vlgmr.msra.gmra.mxu1 %vm66_vm1, %v1143_v12  ;;  %1306 = vmatmul.mubr.msk.bf16.vlgmr.msra.gmra.mxu0 %vm66_vm1, %v52_v14 }
   0xb   :  { %1326 = vmatpush3.bf16.msra.mxu1 %v1473_v13  ;;  %1318 = vmatpush3.bf16.msra.mxu0 %v1472_v10 }
   0xc   :  { %1327 = vmatprep.subr.bf16.mxu1 %v1475_v16  ;;  %1319 = vmatprep.subr.bf16.mxu0 %v1474_v15 }
   0xd   :  { %1321 = vmatprep.mubr.msk.bf16.mxu0 %vm66_vm1, %v196_v22  ;;  %1329 = vmatprep.mubr.msk.bf16.mxu1 %vm66_vm1, %v274_v23 }
   0xf   :  { %1328 = vmatpush3.bf16.msra.mxu1 %v1475_v16  ;;  %1320 = vmatpush3.bf16.msra.mxu0 %v1474_v15 }
  0x10   :  { %1333 = vmatprep.subr.bf16.mxu0 %v1476_v24 }
  0x12   :  { %1330 = vmatmul.mubr.msk.bf16.vlgmr.msra.gmra.mxu1 %vm66_vm1, %v273_v20  ;;  %1322 = vmatmul.mubr.msk.bf16.vlgmr.msra.gmra.mxu0 %vm66_vm1, %v195_v18 }
  0x13   :  { %1334 = vmatpush3.bf16.msra.mxu0 %v1476_v24  ;;  %1337 = vmatprep.mubr.msk.bf16.mxu0 %vm66_vm1, %v1168_v25 }
  0x14   :  { %1335 = vmatprep.subr.bf16.mxu0 %v1477_v26 }
  0x17   :  { %1336 = vmatpush3.bf16.msra.mxu0 %v1477_v26 }
  0x1a   :  { %1338 = vmatmul.mubr.msk.bf16.vlgmr.msra.gmra.mxu0 %vm66_vm1, %v1169_v27 }
  0x1b   :  { %1550 = shalt.err (!%p1547_p4)  }
  0x1c   :  { %26 = dma.hbm_to_vmem [thread:$0]  %s1729_s2, 6144, %s24_s17, [#allocation3]  ;;  %v1174_v50 = vld [vmem:[%s1731_s3] ss:$0 sm:$0xff] }
  0xca   :  { %v1315_v28 = vpop.f32.mrf.mxu1  ;;  %v1307_v29 = vpop.f32.mrf.mxu0 }
  0xcb   :  { %v183_v38 = vadd.f32 %v1315_v28, %v1307_v29 }
  0xcc   :  { %v174_v30 = vpop.f32.mrf.mxu1  ;;  %v107_v31 = vpop.f32.mrf.mxu0 }
  0xcd   :  { %v175_v41 = vadd.f32 %v174_v30, %v107_v31 }
  0xce   :  { %v1316_v32 = vpop.f32.mrf.mxu1  ;;  %v1308_v33 = vpop.f32.mrf.mxu0 }
  0xd0   :  { %v177_v34 = vpop.f32.mrf.mxu1  ;;  %v110_v35 = vpop.f32.mrf.mxu0 }
  0xd1   :  { %v178_v47 = vadd.f32 %v177_v34, %v110_v35 }
  0xd2   :  { %v1331_v36 = vpop.f32.mrf.mxu1  ;;  %v1323_v37 = vpop.f32.mrf.mxu0 }
  0xd3   :  { %v265_v42 = vadd.f32 %v1323_v37, %v183_v38 }
  0xd4   :  { %v327_v39 = vpop.f32.mrf.mxu1  ;;  %v249_v40 = vpop.f32.mrf.mxu0 }
  0xd5   :  { %v263_v45 = vadd.f32 %v249_v40, %v175_v41  ;;  %v343_v48 = vadd.f32 %v1331_v36, %v265_v42 }
  0xd6   :  { %v1332_v43 = vpop.f32.mrf.mxu1  ;;  %v1324_v44 = vpop.f32.mrf.mxu0 }
  0xd7   :  { %v341_v51 = vadd.f32 %v327_v39, %v263_v45 }
  0xd8   :  { %v252_v46 = vpop.f32.mrf.mxu0  ;;  %v330_v57 = vpop.f32.mrf.mxu1 }
  0xd9   :  { %v264_v52 = vadd.f32 %v252_v46, %v178_v47 }
  0xda   :  { %v1339_v49 = vpop.f32.mrf.mxu0 }
  0xdb   :  { %v419_v53 = vadd.f32 %v1339_v49, %v343_v48  ;;  %v342_v59 = vadd.f32 %v330_v57, %v264_v52 }
  0xdc   :  { %v403_v54 = vpop.f32.mrf.mxu0 }
  0xdd   :  { %v1641_v55 = vadd.f32 %v1174_v50, %v419_v53  ;;  %v417_v56 = vadd.f32 %v403_v54, %v341_v51 }
  0xde   :  { %v1340_v58 = vpop.f32.mrf.mxu0 }
  0xdf   :  { %v430_v60 = vmax.f32 %v1641_v55, 0.0  ;;  %v425_v61 = vadd.f32 %v1174_v50, %v417_v56 }
  0xe0   :  { %v406_v62 = vpop.f32.mrf.mxu0 }
  0xe1   :  { %v428_v63 = vmax.f32 %v425_v61, 0.0  ;;  %v418_v0 = vadd.f32 %v406_v62, %v342_v59 }
  0xe3   :  { %v1644_v1 = vadd.f32 %v1174_v50, %v418_v0 }
  0xe5   :  { %v429_v2 = vmax.f32 %v1644_v1, 0.0 }
  0xe6   :  { %1551 = dma.done.wait [#allocation3], 6144 }
  0xe7   :  { %1552 = vsyncadd [#allocation3], 4294961152  ;;  %v1554_v3 = vmov 0.0   ;;  %vm1555_vm4 = vmmov 0   ;;  %v1479_v4 = vld [vmem:[#allocation2 + $0x78] sm:$0xff]   ;;  %v1481_v6 = vld [vmem:[#allocation2 + $0x70] sm:$0xff]  }
  0xe8   :  { %1341 = vmatprep.subr.bf16.mxu1 %v1554_v3  ;;  %1361 = vmatprep.subr.bf16.mxu0 %v1554_v3  ;;  %v1480_v5 = vld [vmem:[#allocation2 + $0x38] sm:$0xff]   ;;  %v1482_v7 = vld [vmem:[#allocation2 + $0x30] sm:$0xff]   ;;  %v1483_v8 = vld [vmem:[#allocation2 + $0x68] sm:$0xff]   ;;  %v437_v14 = vrot.slane %v428_v63, 2  ;;  %v654_v35 = vrot.slane %v429_v2, 2  ;;  %v874_v56 = vrot.slane %v430_v60, 2 }
  0xe9   :  { %1357 = vmatprep.mubr.msk.bf16.mxu1 %vm1555_vm4, %v1554_v3  ;;  %1377 = vmatprep.mubr.msk.bf16.mxu0 %vm1555_vm4, %v1554_v3  ;;  %v1484_v9 = vld [vmem:[#allocation2 + $0x28] sm:$0xff]   ;;  %v1485_v10 = vld [vmem:[#allocation2 + $0x60] sm:$0xff]   ;;  %v1487_v12 = vld [vmem:[#allocation2 + $0x58] sm:$0xff]   ;;  %vm1106_vm5 = vcmask 1041408   ;;  %vm1121_vm6 = vcmask 1024  }
  0xea   :  { %1342 = vmatpush3.bf16.msra.mxu1 %v1479_v4  ;;  %1362 = vmatpush3.bf16.msra.mxu0 %v1480_v5  ;;  %v1486_v11 = vld [vmem:[#allocation2 + $0x20] sm:$0xff]   ;;  %v1488_v13 = vld [vmem:[#allocation2 + $0x18] sm:$0xff]   ;;  %v1489_v15 = vld [vmem:[#allocation2 + $0x50] sm:$0xff]   ;;  %v439_v17 = vmax.f32 %v428_v63, %v437_v14  ;;  %v656_v38 = vmax.f32 %v429_v2, %v654_v35  ;;  %v876_v59 = vmax.f32 %v430_v60, %v874_v56 }
  0xeb   :  { %1343 = vmatprep.subr.bf16.mxu1 %v1554_v3  ;;  %1363 = vmatprep.subr.bf16.mxu0 %v1554_v3  ;;  %v1490_v16 = vld [vmem:[#allocation2 + $0x10] sm:$0xff]   ;;  %v1491_v18 = vld [vmem:[#allocation2 + $0x48] sm:$0xff]   ;;  %v1493_v21 = vld [vmem:[#allocation2 + $0x40] sm:$0xff]  }
  0xec   :  { %v1492_v19 = vld [vmem:[#allocation2 + $0x8] sm:$0xff]   ;;  %v440_v20 = vpack.c.bf16 %v439_v17, %v439_v17  ;;  %v1494_v22 = vld [vmem:[#allocation2] sm:$0xff]   ;;  %v1495_v24 = vld [vmem:[#allocation2 + $0xb8] sm:$0xff]   ;;  %v657_v41 = vpack.c.bf16 %v656_v38, %v656_v38  ;;  %v877_v63 = vpack.c.bf16 %v876_v59, %v876_v59 }
  0xed   :  { %v1496_v25 = vld [vmem:[#allocation2 + $0xf8] sm:$0xff]   ;;  %v1497_v26 = vld [vmem:[#allocation2 + $0xb0] sm:$0xff]   ;;  %v1499_v28 = vld [vmem:[#allocation2 + $0xa8] sm:$0xff]  }
  0xee   :  { %1344 = vmatpush3.bf16.msra.mxu1 %v1481_v6  ;;  %1364 = vmatpush3.bf16.msra.mxu0 %v1482_v7  ;;  %v475_v23 = vrot.slane %v440_v20, 2  ;;  %v1498_v27 = vld [vmem:[#allocation2 + $0xf0] sm:$0xff]   ;;  %v1500_v29 = vld [vmem:[#allocation2 + $0xe8] sm:$0xff]   ;;  %v1501_v30 = vld [vmem:[#allocation2 + $0xa0] sm:$0xff]   ;;  %v782_v43 = vrot.slane %v657_v41, 2  ;;  %v1002_v1 = vrot.slane %v877_v63, 2 }
  0xef   :  { %1345 = vmatprep.subr.bf16.mxu1 %v1554_v3  ;;  %1365 = vmatprep.subr.bf16.mxu0 %v1554_v3  ;;  %v1502_v31 = vld [vmem:[#allocation2 + $0xe0] sm:$0xff]   ;;  %v1503_v32 = vld [vmem:[#allocation2 + $0x98] sm:$0xff]   ;;  %v1505_v34 = vld [vmem:[#allocation2 + $0x90] sm:$0xff]  }
  0xf0   :  { %v1504_v33 = vld [vmem:[#allocation2 + $0xd8] sm:$0xff]   ;;  %v1506_v36 = vld [vmem:[#allocation2 + $0xd0] sm:$0xff]   ;;  %v1507_v37 = vld [vmem:[#allocation2 + $0x88] sm:$0xff]  }
  0xf1   :  { %v1508_v39 = vld [vmem:[#allocation2 + $0xc8] sm:$0xff]   ;;  %v1509_v40 = vld [vmem:[#allocation2 + $0x80] sm:$0xff]   ;;  %v1511_v44 = vld [vmem:[#allocation2 + $0x138] sm:$0xff]  }
  0xf2   :  { %1346 = vmatpush3.bf16.msra.mxu1 %v1483_v8  ;;  %1366 = vmatpush3.bf16.msra.mxu0 %v1484_v9  ;;  %v1510_v42 = vld [vmem:[#allocation2 + $0xc0] sm:$0xff]   ;;  %v1512_v45 = vld [vmem:[#allocation2 + $0x178] sm:$0xff]   ;;  %v1513_v46 = vld [vmem:[#allocation2 + $0x130] sm:$0xff]  }
  0xf3   :  { %1347 = vmatprep.subr.bf16.mxu1 %v1554_v3  ;;  %1367 = vmatprep.subr.bf16.mxu0 %v1554_v3  ;;  %v1514_v47 = vld [vmem:[#allocation2 + $0x170] sm:$0xff]   ;;  %v1515_v48 = vld [vmem:[#allocation2 + $0x128] sm:$0xff]   ;;  %v1517_v50 = vld [vmem:[#allocation2 + $0x120] sm:$0xff]  }
  0xf4   :  { %v1516_v49 = vld [vmem:[#allocation2 + $0x168] sm:$0xff]   ;;  %v1518_v51 = vld [vmem:[#allocation2 + $0x160] sm:$0xff]   ;;  %v1519_v52 = vld [vmem:[#allocation2 + $0x118] sm:$0xff]  }
  0xf5   :  { %v1520_v53 = vld [vmem:[#allocation2 + $0x158] sm:$0xff]   ;;  %v1521_v54 = vld [vmem:[#allocation2 + $0x110] sm:$0xff]   ;;  %v1523_v58 = vld [vmem:[#allocation2 + $0x108] sm:$0xff]  }
  0xf6   :  { %1348 = vmatpush3.bf16.msra.mxu1 %v1485_v10  ;;  %1368 = vmatpush3.bf16.msra.mxu0 %v1486_v11  ;;  %v1522_v57 = vld [vmem:[#allocation2 + $0x150] sm:$0xff]   ;;  %v1524_v61 = vld [vmem:[#allocation2 + $0x148] sm:$0xff]   ;;  %v1525_v62 = vld [vmem:[#allocation2 + $0x100] sm:$0xff]  }
  0xf7   :  { %1349 = vmatprep.subr.bf16.mxu1 %v1554_v3  ;;  %1369 = vmatprep.subr.bf16.mxu0 %v1554_v3  ;;  %v1526_v0 = vld [vmem:[#allocation2 + $0x140] sm:$0xff]  }
  0xf8   :  { %v1225_v35 = vld [vmem:[%s1731_s3 + $0x3] ss:$0 sm:$0xff] }
  0xfa   :  { %1350 = vmatpush3.bf16.msra.mxu1 %v1487_v12  ;;  %1370 = vmatpush3.bf16.msra.mxu0 %v1488_v13 }
  0xfb   :  { %1351 = vmatprep.subr.bf16.mxu1 %v1554_v3  ;;  %1371 = vmatprep.subr.bf16.mxu0 %v1554_v3 }
  0xfe   :  { %1352 = vmatpush3.bf16.msra.mxu1 %v1489_v15  ;;  %1372 = vmatpush3.bf16.msra.mxu0 %v1490_v16 }
  0xff   :  { %1353 = vmatprep.subr.bf16.mxu1 %v1554_v3  ;;  %1373 = vmatprep.subr.bf16.mxu0 %v1554_v3 }
 0x102   :  { %1354 = vmatpush3.bf16.msra.mxu1 %v1491_v18  ;;  %1374 = vmatpush3.bf16.msra.mxu0 %v1492_v19 }
 0x103   :  { %1355 = vmatprep.subr.bf16.mxu1 %v1554_v3  ;;  %1375 = vmatprep.subr.bf16.mxu0 %v1554_v3 }
 0x106   :  { %1356 = vmatpush3.bf16.msra.mxu1 %v1493_v21  ;;  %1376 = vmatpush3.bf16.msra.mxu0 %v1494_v22  ;;  %v1223_v22 = vld [vmem:[%s1731_s3 + $0x1] ss:$0 sm:$0xff] }
 0x107   :  { %1381 = vmatprep.subr.bf16.mxu1 %v1554_v3  ;;  %1401 = vmatprep.subr.bf16.mxu0 %v1554_v3 }
 0x109   :  { %1358 = vmatmul.mubr.bf16.vlgmr.msra.gmra.mxu1 %v475_v23  ;;  %1378 = vmatmul.mubr.bf16.vlgmr.msra.gmra.mxu0 %v440_v20 }
 0x10a   :  { %1382 = vmatpush3.bf16.msra.mxu1 %v1495_v24  ;;  %1402 = vmatpush3.bf16.msra.mxu0 %v1496_v25 }
 0x10b   :  { %1383 = vmatprep.subr.bf16.mxu1 %v1554_v3  ;;  %1403 = vmatprep.subr.bf16.mxu0 %v1554_v3 }
 0x10c   :  { %1397 = vmatprep.mubr.msk.bf16.mxu1 %vm1555_vm4, %v1554_v3  ;;  %1417 = vmatprep.mubr.msk.bf16.mxu0 %vm1555_vm4, %v1554_v3 }
 0x10e   :  { %1384 = vmatpush3.bf16.msra.mxu1 %v1497_v26  ;;  %1404 = vmatpush3.bf16.msra.mxu0 %v1498_v27 }
 0x10f   :  { %1385 = vmatprep.subr.bf16.mxu1 %v1554_v3  ;;  %1405 = vmatprep.subr.bf16.mxu0 %v1554_v3 }
 0x112   :  { %1386 = vmatpush3.bf16.msra.mxu1 %v1499_v28  ;;  %1406 = vmatpush3.bf16.msra.mxu0 %v1500_v29 }
 0x113   :  { %1387 = vmatprep.subr.bf16.mxu1 %v1554_v3  ;;  %1407 = vmatprep.subr.bf16.mxu0 %v1554_v3 }
 0x116   :  { %1388 = vmatpush3.bf16.msra.mxu1 %v1501_v30  ;;  %1408 = vmatpush3.bf16.msra.mxu0 %v1502_v31  ;;  %v1224_v30 = vld [vmem:[%s1731_s3 + $0x2] ss:$0 sm:$0xff] }
 0x117   :  { %1389 = vmatprep.subr.bf16.mxu1 %v1554_v3  ;;  %1409 = vmatprep.subr.bf16.mxu0 %v1554_v3 }
 0x11a   :  { %1390 = vmatpush3.bf16.msra.mxu1 %v1503_v32  ;;  %1410 = vmatpush3.bf16.msra.mxu0 %v1504_v33 }
 0x11b   :  { %1391 = vmatprep.subr.bf16.mxu1 %v1554_v3  ;;  %1411 = vmatprep.subr.bf16.mxu0 %v1554_v3 }
 0x11e   :  { %1392 = vmatpush3.bf16.msra.mxu1 %v1505_v34  ;;  %1412 = vmatpush3.bf16.msra.mxu0 %v1506_v36 }
 0x11f   :  { %1393 = vmatprep.subr.bf16.mxu1 %v1554_v3  ;;  %1413 = vmatprep.subr.bf16.mxu0 %v1554_v3 }
 0x122   :  { %1394 = vmatpush3.bf16.msra.mxu1 %v1507_v37  ;;  %1414 = vmatpush3.bf16.msra.mxu0 %v1508_v39 }
 0x123   :  { %1395 = vmatprep.subr.bf16.mxu1 %v1554_v3  ;;  %1415 = vmatprep.subr.bf16.mxu0 %v1554_v3 }
 0x126   :  { %1396 = vmatpush3.bf16.msra.mxu1 %v1509_v40  ;;  %1416 = vmatpush3.bf16.msra.mxu0 %v1510_v42 }
 0x127   :  { %1421 = vmatprep.subr.bf16.mxu1 %v1554_v3  ;;  %1441 = vmatprep.subr.bf16.mxu0 %v1554_v3 }
 0x129   :  { %1398 = vmatmul.mubr.bf16.vlgmr.msra.gmra.mxu1 %v657_v41  ;;  %1418 = vmatmul.mubr.bf16.vlgmr.msra.gmra.mxu0 %v782_v43 }
 0x12a   :  { %1422 = vmatpush3.bf16.msra.mxu1 %v1511_v44  ;;  %1442 = vmatpush3.bf16.msra.mxu0 %v1512_v45 }
 0x12b   :  { %1423 = vmatprep.subr.bf16.mxu1 %v1554_v3  ;;  %1443 = vmatprep.subr.bf16.mxu0 %v1554_v3 }
 0x12c   :  { %1437 = vmatprep.mubr.msk.bf16.mxu1 %vm1555_vm4, %v1554_v3  ;;  %1457 = vmatprep.mubr.msk.bf16.mxu0 %vm1555_vm4, %v1554_v3 }
 0x12e   :  { %1424 = vmatpush3.bf16.msra.mxu1 %v1513_v46  ;;  %1444 = vmatpush3.bf16.msra.mxu0 %v1514_v47 }
 0x12f   :  { %1425 = vmatprep.subr.bf16.mxu1 %v1554_v3  ;;  %1445 = vmatprep.subr.bf16.mxu0 %v1554_v3 }
 0x132   :  { %1426 = vmatpush3.bf16.msra.mxu1 %v1515_v48  ;;  %1446 = vmatpush3.bf16.msra.mxu0 %v1516_v49 }
 0x133   :  { %1427 = vmatprep.subr.bf16.mxu1 %v1554_v3  ;;  %1447 = vmatprep.subr.bf16.mxu0 %v1554_v3 }
 0x136   :  { %1428 = vmatpush3.bf16.msra.mxu1 %v1517_v50  ;;  %1448 = vmatpush3.bf16.msra.mxu0 %v1518_v51 }
 0x137   :  { %1429 = vmatprep.subr.bf16.mxu1 %v1554_v3  ;;  %1449 = vmatprep.subr.bf16.mxu0 %v1554_v3 }
 0x13a   :  { %1430 = vmatpush3.bf16.msra.mxu1 %v1519_v52  ;;  %1450 = vmatpush3.bf16.msra.mxu0 %v1520_v53 }
 0x13b   :  { %1431 = vmatprep.subr.bf16.mxu1 %v1554_v3  ;;  %1451 = vmatprep.subr.bf16.mxu0 %v1554_v3 }
 0x13e   :  { %1432 = vmatpush3.bf16.msra.mxu1 %v1521_v54  ;;  %1452 = vmatpush3.bf16.msra.mxu0 %v1522_v57 }
 0x13f   :  { %1433 = vmatprep.subr.bf16.mxu1 %v1554_v3  ;;  %1453 = vmatprep.subr.bf16.mxu0 %v1554_v3 }
 0x142   :  { %1434 = vmatpush3.bf16.msra.mxu1 %v1523_v58  ;;  %1454 = vmatpush3.bf16.msra.mxu0 %v1524_v61 }
 0x143   :  { %1435 = vmatprep.subr.bf16.mxu1 %v1554_v3  ;;  %1455 = vmatprep.subr.bf16.mxu0 %v1554_v3 }
 0x146   :  { %1436 = vmatpush3.bf16.msra.mxu1 %v1525_v62  ;;  %1456 = vmatpush3.bf16.msra.mxu0 %v1526_v0 }
 0x149   :  { %1438 = vmatmul.mubr.bf16.vlgmr.msra.gmra.mxu1 %v877_v63  ;;  %1458 = vmatmul.mubr.bf16.vlgmr.msra.gmra.mxu0 %v1002_v1 }
 0x1c9   :  { %v559_v55 = vpop.f32.mrf.mxu1  ;;  %v647_v60 = vpop.f32.mrf.mxu0 }
 0x1ca   :  { %v648_v16 = vadd.f32 %v647_v60, %v559_v55 }
 0x1cb   :  { %v1359_v2 = vpop.f32.mrf.mxu1  ;;  %v1379_v4 = vpop.f32.mrf.mxu0 }
 0x1cd   :  { %v562_v5 = vpop.f32.mrf.mxu1  ;;  %v650_v6 = vpop.f32.mrf.mxu0 }
 0x1cf   :  { %v1360_v7 = vpop.f32.mrf.mxu1  ;;  %v1380_v8 = vpop.f32.mrf.mxu0 }
 0x1e9   :  { %v757_v9 = vpop.f32.mrf.mxu1  ;;  %v866_v10 = vpop.f32.mrf.mxu0 }
 0x1ea   :  { %v763_v17 = vadd.f32 %v757_v9, %v648_v16 }
 0x1eb   :  { %v1399_v11 = vpop.f32.mrf.mxu1  ;;  %v1419_v12 = vpop.f32.mrf.mxu0 }
 0x1ec   :  { %v872_v18 = vadd.f32 %v866_v10, %v763_v17 }
 0x1ed   :  { %v760_v13 = vpop.f32.mrf.mxu1  ;;  %v869_v14 = vpop.f32.mrf.mxu0 }
 0x1ef   :  { %v1400_v3 = vpop.f32.mrf.mxu1  ;;  %v1420_v15 = vpop.f32.mrf.mxu0 }
 0x209   :  { %v977_v19 = vpop.f32.mrf.mxu1  ;;  %v1086_v21 = vpop.f32.mrf.mxu0 }
 0x20a   :  { %v983_v20 = vadd.f32 %v977_v19, %v872_v18 }
 0x20b   :  { %v1439_v23 = vpop.f32.mrf.mxu1  ;;  %v1459_v25 = vpop.f32.mrf.mxu0 }
 0x20c   :  { %v1092_v24 = vadd.f32 %v1086_v21, %v983_v20 }
 0x20d   :  { %v980_v26 = vpop.f32.mrf.mxu1  ;;  %v1089_v28 = vpop.f32.mrf.mxu0 }
 0x20e   :  { %v1098_v27 = vadd.f32 %v1223_v22, %v1092_v24 }
 0x20f   :  { %v1440_v29 = vpop.f32.mrf.mxu1  ;;  %v1460_v32 = vpop.f32.mrf.mxu0 }
 0x210   :  { %v1099_v31 = vmax.f32 %v1098_v27, 0.0 }
 0x212   :  { %v1105_v33 = vmul.f32 %v1224_v30, %v1099_v31 }
 0x214   :  { %v1107_v34 = vsel %vm1106_vm5, %v1105_v33, 0.0 }
 0x215   :  { %1108 = vadd.xlane.f32.xlu0 %v1107_v34 }
 0x29e   :  { %v1109_v36 = vpop.xlane.xlu0 %1108 }
 0x29f   :  { %v1115_v37 = vadd.f32 %v1225_v35, %v1109_v36 }
 0x2a1   :  { %v1116_v38 = vsub.f32 0.0, %v1115_v37 }
 0x2a3   :  { %v1117_v39 = vmul.f32 1.442695, %v1116_v38 }
 0x2a5   :  { %1527 = vpow2.f32 %v1117_v39 }
 0x2b2   :  { %v1528_v40 = vpop.eup %1527 }
 0x2b3   :  { %v1119_v41 = vadd.f32 1.0, %v1528_v40 }
 0x2b5   :  { %1529 = vrcp.f32 %v1119_v41 }
 0x2c2   :  { %v1530_v42 = vpop.eup %1529 }
 0x2c3   :  { %1122 = vst.msk [vmem:[%s1730_s4] sm:$0x3] %vm1121_vm6, %v1530_v42 }
 0x2c4   :  { %1127 = vsyncmov [#allocation3] }
 0x2c7   :  { %s1128_s29 = vpop.sfrf %1127 }
 0x2c8   :  { %p1226_p5 = scmp.ne.s32.totalorder %s1128_s29, 0 }
 0x2ca   :  { %1132 = shalt.err (%p1226_p5)  }

</bundles_post_ra>
